<compile_context>
chip_gen: v5e
topology: v5e:2x2
jax: 0.10.0
libtpu: 0.0.40
codegen_flags: <defaults>
</compile_context>

<pallas_src>
import functools

import jax
import jax.numpy as jnp
from jax.experimental import pallas as pl
from jax.experimental.pallas import tpu as pltpu

# Conservative working-set budget: v7x has 64 MiB physical VMEM (32 MiB scoped
# default); v5e/v6e have 128 MiB.  Every pipelined operand is counted with its
# double buffer, so staying under 24 MiB is safe on all three generations.
_VMEM_BUDGET_BYTES = 24 * 1024 * 1024


def _cdiv(a, b):
    return -(-a // b)


def _round_up(a, m):
    return _cdiv(a, m) * m


def _pad_axis_to(x, axis, size):
    pad = size - x.shape[axis]
    if pad <= 0:
        return x
    widths = [(0, 0)] * x.ndim
    widths[axis] = (0, pad)
    return jnp.pad(x, widths)


def _choose_bt(B, bt_max=512):
    # int8 counts want sublane tiles that are multiples of 32.  For large B aim
    # for >= 2 B-tiles so the "parallel" grid axis gives both v7x TensorCores
    # work (v5e/v6e are single-TC, where this is neutral).
    if B <= 32:
        return 32
    return min(bt_max, _round_up(_cdiv(B, 2), 32))


def _emb_fits_vmem(bt, vt, Vp, Dp):
    fixed = (2 * bt * vt * 1        # int8 counts, double-buffered
             + 2 * bt * 4           # (bt, 1) f32 denominators
             + 2 * bt * Dp * 4)     # (bt, Dp) f32 output blocks
    resident_emb = 2 * Vp * Dp * 2  # full bf16 table (pessimistic: 2 buffers)
    return fixed + resident_emb <= _VMEM_BUDGET_BYTES


def _bow_encode_kernel(cnt_ref, den_ref, emb_ref, o_ref, *, vt, emb_resident):
    k = pl.program_id(1)

    @pl.when(k == 0)
    def _init():
        o_ref[...] = jnp.zeros_like(o_ref)

    # Single widening cast: int8 counts -> bf16 MXU operand (exact for <= 127).
    cnt = cnt_ref[...].astype(jnp.bfloat16)                      # [bt, vt]

    if emb_resident:
        # Table is fully VMEM-resident (fetched once); slice the current V tile.
        off = pl.multiple_of(k * vt, vt)
        emb = emb_ref[pl.ds(off, vt), :]                         # [vt, Dp]
    else:
        emb = emb_ref[...]                                       # [vt, Dp]

    # MXU: counts @ (idf-scaled embeddings), bf16 in, f32 accumulation directly
    # into the resident output block (no separate accumulator scratch).
    o_ref[...] += jnp.dot(cnt, emb, preferred_element_type=jnp.float32)

    @pl.when(k == pl.num_programs(1) - 1)
    def _finalize():
        denom = jnp.maximum(den_ref[...], 1.0)        # matches torch clamp(min=1)
        o_ref[...] = o_ref[...] * pl.reciprocal(denom, approx=True)  # EUP slot


@functools.partial(jax.jit, static_argnames=("bt", "vt", "emb_resident"))
def _bow_encode(counts, den, emb, *, bt, vt, emb_resident):
    """counts: int8 [Bp, Vp]; den: f32 [Bp, 1]; emb: bf16 [Vp, Dp] -> f32 [Bp, Dp]."""
    Bp, Vp = counts.shape
    _, Dp = emb.shape
    grid = (Bp // bt, Vp // vt)

    if emb_resident:
        emb_spec = pl.BlockSpec((Vp, Dp), lambda n, k: (0, 0))   # fetched once
    else:
        emb_spec = pl.BlockSpec((vt, Dp), lambda n, k: (k, 0))   # streamed per tile

    kernel = functools.partial(_bow_encode_kernel, vt=vt, emb_resident=emb_resident)

    return pl.pallas_call(
        kernel,
        out_shape=jax.ShapeDtypeStruct((Bp, Dp), jnp.float32),
        grid_spec=pltpu.PrefetchScalarGridSpec(
            num_scalar_prefetch=0,
            grid=grid,
            in_specs=[
                pl.BlockSpec((bt, vt), lambda n, k: (n, k)),     # int8 counts
                pl.BlockSpec((bt, 1), lambda n, k: (n, 0)),      # denominators
                emb_spec,                                        # bf16 idf*embeds
            ],
            out_specs=pl.BlockSpec((bt, Dp), lambda n, k: (n, 0)),
        ),
        compiler_params=pltpu.CompilerParams(
            dimension_semantics=("parallel", "arbitrary"),
            vmem_limit_bytes=32 * 1024 * 1024,
        ),
    )(counts, den, emb)


def prepare_entity_sum_state(word_embeds, token_ctr_by_entity_id, idf=None, *, vt=2048):
    """One-time 'module init': pad/cast the static tables, fold idf, precompute
    per-entity denominators.  Nothing here runs per forward call."""
    V, D = word_embeds.shape
    E, V2 = token_ctr_by_entity_id.shape
    assert V == V2
    if idf is None:
        idf = jnp.ones((V,), jnp.float32)

    vt_eff = min(vt, _round_up(V, 128))
    Vp = _round_up(V, vt_eff)
    Dp = _round_up(D, 128)

    # int8 storage of the bag-of-words counters (dominant HBM stream -> 1 B/elem).
    # TODO(synk): switch to int16 storage if per-entity token counts can exceed 127.
    counts_i8 = _pad_axis_to(
        jnp.clip(token_ctr_by_entity_id, 0, 127).astype(jnp.int8), 1, Vp)

    idf_p = _pad_axis_to(idf.astype(jnp.float32), 0, Vp)
    emb_p = _pad_axis_to(
        _pad_axis_to(word_embeds.astype(jnp.float32), 0, Vp), 1, Dp)
    # Fold idf into the embedding table once; bf16 halves the table DMA and runs
    # the MXU at full bf16 rate.
    emb_scaled = (idf_p[:, None] * emb_p).astype(jnp.bfloat16)   # [Vp, Dp]

    # Hoisted denominator: sum_v counts * idf, exact in f32, computed once.
    den = (counts_i8.astype(jnp.float32) @ idf_p).reshape(E, 1)  # [E, 1]

    return dict(counts=counts_i8, emb=emb_scaled, den=den, dim=D, vt=vt_eff)


def entity_sum_encode(entity_id, state, *, bt=None, emb_resident=None):
    """Forward pass.  entity_id: int [...]; returns f32 [*entity_id.shape, D]."""
    counts_t = state["counts"]            # int8 [E, Vp]
    den_t = state["den"]                  # f32  [E, 1]
    emb_t = state["emb"]                  # bf16 [Vp, Dp]
    D = state["dim"]
    vt = state["vt"]
    Vp, Dp = emb_t.shape

    orig_shape = entity_id.shape
    B = int(entity_id.size)
    bt_eff = bt if bt is not None else _choose_bt(B)
    Bp = _round_up(max(B, 1), bt_eff)

    # Pad the batch by padding the tiny ids vector with a valid row (0); the
    # padded rows are sliced off below.  No per-call jnp.pad on [B, V] counts.
    ids = entity_id.reshape(-1).astype(jnp.int32)
    if Bp > B:
        ids = jnp.concatenate([ids, jnp.zeros((Bp - B,), jnp.int32)])

    counts = counts_t[ids]                # int8 [Bp, Vp] row gather
    den = den_t[ids]                      # f32  [Bp, 1]

    if emb_resident is None:
        emb_resident = _emb_fits_vmem(bt_eff, vt, Vp, Dp)

    out = _bow_encode(counts, den, emb_t, bt=bt_eff, vt=vt,
                      emb_resident=bool(emb_resident))
    return out[:B, :D].reshape(*orig_shape, D)


def precompute_entity_encodings(state, **kwargs):
    """Review option (a): the counter table is static module state, so encode
    every entity once; the forward then becomes a cheap [E, D] row gather."""
    E = state["counts"].shape[0]
    ids = jnp.arange(E, dtype=jnp.int32).reshape(1, E)
    return entity_sum_encode(ids, state, **kwargs)[0]            # [E, D]


def entity_sum_encode_precomputed(entity_id, entity_encodings):
    return entity_encodings[entity_id.reshape(-1)].reshape(*entity_id.shape, -1)


if __name__ == "__main__":
    key = jax.random.PRNGKey(0)
    k_emb, k_cnt, k_idf, k_ids = jax.random.split(key, 4)

    NUM_ENTITIES = 10
    VOCAB = 1100      # not a multiple of 128 -> exercises one-time V padding
    DIM = 96          # not a multiple of 128 -> exercises lane padding of D
    B0, B1 = 2, 4     # entity_id shape

    # Deterministic synthetic module state.
    word_embeds = jax.random.normal(k_emb, (VOCAB, DIM), dtype=jnp.float32)
    raw = jax.random.randint(k_cnt, (NUM_ENTITIES, VOCAB), 0, 6, dtype=jnp.int32)
    token_ctr_by_entity_id = jnp.where(raw >= 4, raw - 3, 0).astype(jnp.int32)
    idf = jax.random.uniform(k_idf, (VOCAB,), minval=0.5, maxval=2.0,
                             dtype=jnp.float32)
    entity_id = jax.random.randint(k_ids, (B0, B1), 0, NUM_ENTITIES,
                                   dtype=jnp.int32)

    # One-time "module init" (vt=512 so the demo grid has several V tiles).
    state = prepare_entity_sum_state(word_embeds, token_ctr_by_entity_id, idf,
                                     vt=512)

    # Forward through the Pallas kernel (auto: VMEM-resident embedding table).
    out = jax.block_until_ready(entity_sum_encode(entity_id, state))

    # Also exercise the blocked-embedding fallback (large V*D on v7x's VMEM).
    out_blocked = jax.block_until_ready(
        entity_sum_encode(entity_id, state, emb_resident=False))

    # Review option (a): precompute per-entity encodings once, forward = gather.
    enc_all = jax.block_until_ready(precompute_entity_encodings(state))
    out_pre = entity_sum_encode_precomputed(entity_id, enc_all)

    # Reference in plain JAX (f32, original PyTorch module semantics).
    cnts = token_ctr_by_entity_id[entity_id.reshape(-1)].astype(jnp.float32)
    w = cnts * idf[None, :]
    ref = (w @ word_embeds) / jnp.maximum(w.sum(-1, keepdims=True), 1.0)
    ref = ref.reshape(B0, B1, DIM)

    assert out.shape == (B0, B1, DIM)
    # Tolerance accounts for bf16 MXU inputs + approx reciprocal.
    for got in (out, out_blocked, out_pre):
        assert got.shape == (B0, B1, DIM)
        assert jnp.allclose(got, ref, atol=2e-2, rtol=2e-2)

    print("KERNEL_OK")
</pallas_src>

<mosaic_0001>
module attributes {stable_mosaic.version = 11 : i64} {
  func.func @_bow_encode_kernel(%arg0: i32, %arg1: i32, %arg2: memref<32x512xi8, #tpu.memory_space<vmem>>, %arg3: memref<32x1xf32, #tpu.memory_space<vmem>>, %arg4: memref<1536x128xbf16, #tpu.memory_space<vmem>>, %arg5: memref<32x128xf32, #tpu.memory_space<vmem>>) attributes {dimension_semantics = [#tpu.dimension_semantics<parallel>, #tpu.dimension_semantics<arbitrary>], iteration_bounds = array<i64: 1, 3>, scalar_prefetch = 0 : i64, scratch_operands = 0 : i64, tpu.core_type = #tpu.core_type<tc>, window_params = [{transform_indices = @transform_0, window_bounds = array<i64: 32, 512>}, {transform_indices = @transform_1, window_bounds = array<i64: 32, 1>}, {pipeline_mode = #tpu.pipeline_mode<synchronous>, transform_indices = @transform_2, window_bounds = array<i64: 1536, 128>}, {transform_indices = @transform_3, window_bounds = array<i64: 32, 128>}]} {
    %c0_i32 = arith.constant 0 : i32
    %0 = arith.cmpi eq, %arg1, %c0_i32 : i32
    %1 = arith.extui %0 : i1 to i32
    %c0_i32_0 = arith.constant 0 : i32
    %2 = arith.cmpi ne, %1, %c0_i32_0 : i32
    scf.if %2 {
      %cst_8 = arith.constant 0.000000e+00 : f32
      %16 = vector.broadcast %cst_8 : f32 to vector<32x128xf32>
      %c0_9 = arith.constant 0 : index
      %c0_10 = arith.constant 0 : index
      %17 = vector.load %arg5[%c0_9, %c0_10] : memref<32x128xf32, #tpu.memory_space<vmem>>, vector<32x128xf32>
      tpu.vector_store %arg5[%c0_9, %c0_10], %16 {strides = array<i32>} : memref<32x128xf32, #tpu.memory_space<vmem>>, vector<32x128xf32>,
    } else {
    }
    %c0 = arith.constant 0 : index
    %c0_1 = arith.constant 0 : index
    %3 = vector.load %arg2[%c0, %c0_1] : memref<32x512xi8, #tpu.memory_space<vmem>>, vector<32x512xi8>
    %4 = arith.sitofp %3 : vector<32x512xi8> to vector<32x512xbf16>
    %c512_i32 = arith.constant 512 : i32
    %5 = arith.muli %arg1, %c512_i32 : i32
    %6 = tpu.assume_multiple %5, 512 : i32
    %7 = arith.index_cast %6 : i32 to index
    %c0_2 = arith.constant 0 : index
    %8 = vector.load %arg4[%7, %c0_2] : memref<1536x128xbf16, #tpu.memory_space<vmem>>, vector<512x128xbf16>
    %c0_3 = arith.constant 0 : index
    %c0_4 = arith.constant 0 : index
    %9 = vector.load %arg5[%c0_3, %c0_4] : memref<32x128xf32, #tpu.memory_space<vmem>>, vector<32x128xf32>
    %cst = arith.constant dense<0.000000e+00> : vector<32x128xf32>
    %10 = tpu.matmul %4, %8, %cst {dimension_numbers = #tpu.dot_dimension_numbers<[1], [0], [0], [1], [0, 0, 1, 1], [], []>} : vector<32x512xbf16>, vector<512x128xbf16>, vector<32x128xf32> -> vector<32x128xf32>
    %11 = arith.addf %9, %10 : vector<32x128xf32>
    %c0_5 = arith.constant 0 : index
    %c0_6 = arith.constant 0 : index
    %12 = vector.load %arg5[%c0_5, %c0_6] : memref<32x128xf32, #tpu.memory_space<vmem>>, vector<32x128xf32>
    tpu.vector_store %arg5[%c0_5, %c0_6], %11 {strides = array<i32>} : memref<32x128xf32, #tpu.memory_space<vmem>>, vector<32x128xf32>,
    %c2_i32 = arith.constant 2 : i32
    %13 = arith.cmpi eq, %arg1, %c2_i32 : i32
    %14 = arith.extui %13 : i1 to i32
    %c0_i32_7 = arith.constant 0 : i32
    %15 = arith.cmpi ne, %14, %c0_i32_7 : i32
    scf.if %15 {
      %c0_8 = arith.constant 0 : index
      %c0_9 = arith.constant 0 : index
      %16 = vector.load %arg3[%c0_8, %c0_9] : memref<32x1xf32, #tpu.memory_space<vmem>>, vector<32x1xf32>
      %cst_10 = arith.constant 1.000000e+00 : f32
      %17 = vector.broadcast %cst_10 : f32 to vector<32x1xf32>
      %18 = arith.maximumf %16, %17 : vector<32x1xf32>
      %c0_11 = arith.constant 0 : index
      %c0_12 = arith.constant 0 : index
      %19 = vector.load %arg5[%c0_11, %c0_12] : memref<32x128xf32, #tpu.memory_space<vmem>>, vector<32x128xf32>
      %20 = tpu.reciprocal %18 {approx = true} : vector<32x1xf32> -> vector<32x1xf32>
      %21 = vector.broadcast %20 : vector<32x1xf32> to vector<32x128xf32>
      %22 = arith.mulf %19, %21 : vector<32x128xf32>
      %c0_13 = arith.constant 0 : index
      %c0_14 = arith.constant 0 : index
      %23 = vector.load %arg5[%c0_13, %c0_14] : memref<32x128xf32, #tpu.memory_space<vmem>>, vector<32x128xf32>
      tpu.vector_store %arg5[%c0_13, %c0_14], %22 {strides = array<i32>} : memref<32x128xf32, #tpu.memory_space<vmem>>, vector<32x128xf32>,
    } else {
    }
    return
  }
  func.func @transform_0(%arg0: i32, %arg1: i32) -> (i32, i32) {
    %c0_i32 = arith.constant 0 : i32
    return %arg0, %arg1 : i32, i32
  }
  func.func @transform_1(%arg0: i32, %arg1: i32) -> (i32, i32) {
    %c0_i32 = arith.constant 0 : i32
    %c0_i32_0 = arith.constant 0 : i32
    return %arg0, %c0_i32 : i32, i32
  }
  func.func @transform_2(%arg0: i32, %arg1: i32) -> (i32, i32) {
    %c0_i32 = arith.constant 0 : i32
    %c0_i32_0 = arith.constant 0 : i32
    %c0_i32_1 = arith.constant 0 : i32
    return %c0_i32, %c0_i32_0 : i32, i32
  }
  func.func @transform_3(%arg0: i32, %arg1: i32) -> (i32, i32) {
    %c0_i32 = arith.constant 0 : i32
    %c0_i32_0 = arith.constant 0 : i32
    return %arg0, %c0_i32 : i32, i32
  }
}

</mosaic_0001>

<bundles_post_ra>
// kernel: _bow_encode.1
= control target key start
LH: loop header
LB: loop body
LE: loop exit
PB: predicated region body
PF: predicated region fallthrough
CT: control target
= control target key end

     0   :  { %8 = vsyncpa [#allocation3], 0  ;;  %s1427_s0 = inlined_call_operand.hbm [shape: s8[32,1536], index: 0, kind: input, shape index: {}]   ;;  %s1428_s1 = inlined_call_operand.vmem [shape: f32[32,1], index: 1, kind: input, shape index: {}]   ;;  %s1429_s2 = inlined_call_operand.hbm [shape: bf16[1536,128], index: 2, kind: input, shape index: {}]   ;;  %s1430_s3 = inlined_call_operand.hbm [shape: f32[32,128], index: 3, kind: output, shape index: {}]  }
   0x1   :  { %10 = vsyncpa [#allocation3 + $0x1], 0 }
   0x2   :  { %11 = vsyncpa [#allocation6], 0 }
   0x3   :  { %12 = vsyncpa [#allocation4], 0  ;;  %s1238_s12 = smov 0   ;;  %s1240_s13 = smov 0  }
   0x4   :  { %s1242_s14 = smov 0   ;;  %s1244_s15 = smov 0  }
   0x5   :  { %s1246_s16 = smov 0   ;;  %s1248_s17 = smov 0  }
   0x6 LB: > { %s793_s18 = sadd.s32 4294967295, %s1208_s17   ;;  %p794_p0 = scmp.ge.s32.totalorder %s1208_s17, 1  ;;  %s1208_s17 = sphi %s1248_s17, %s18_s17   ;;  %s1204_s16 = sphi %s1246_s16, %s1439_s16   ;;  %s1200_s15 = sphi %s1244_s15, %s1438_s15   ;;  %s1196_s14 = sphi %s1242_s14, %s1437_s14   ;;  %s1192_s13 = sphi %s1240_s13, %s1436_s13   ;;  %s1188_s12 = sphi %s1238_s12, %s1435_s12  }
   0x7   : > { %p1272_p1 = scmp.eq.s32.totalorder %s793_s18, 0  ;;  %p136_p2 = scmp.lt.s32.totalorder %s1208_s17, 4 }
   0x8   : > { %s156_s22 = sshll.u32 %s1429_s2, 4  ;;  %s1210_s24 = smov [#allocation5]   ;;  %s157_s22 = int_to_ptr.hbm [resolvable:$true] %s156_s22 }
   0x9   : > { %p1280_p3 = pnand %p794_p0, %p136_p2  ;;  %s158_s25 = sshll.u32 %s1210_s24, 4  ;;  %s159_s25 = int_to_ptr.vmem [resolvable:$true] %s158_s25 }
   0xa   : > { %s1211_s26 = smov 64   ;;  %s1212_s27 = smov 4  }
   0xb   : > { %p983_p4 = pneg %p1280_p3  ;;  %s27_s28 = sadd.s32 1, %s1204_s16 }
   0xc   : > { %p28_p6 = scmp.ge.s32.totalorder %s27_s28, 3  ;;  %p46_p7 = scmp.ne.s32.totalorder %s1196_s14, %s1192_s13 }
   0xd   : > { %p984_p5 = pnand %p983_p4, %p1272_p1  ;;  %p47_p8 = scmp.eq.s32.totalorder %s1208_s17, 0 }
   0xe   : > { %s1441_s28 = smov (%p28_p6, %s27_s28), 0  ;;  %s39_s29 = sadd.s32 1, %s1196_s14 }
   0xf   : > { %986 = dma.hbm_to_vmem [thread:$0]  (!%p984_p5), %s157_s22, 12288, %s159_s25, [#allocation6], %s1211_s26, %s1211_s26, %s1212_s27  }
  0x10   : > { %p52_p9 = scmp.ne.s32.totalorder %s1192_s13, %s1188_s12  ;;  %s35_s30 = ssub.s32 %s1204_s16, %s1441_s28 }
  0x11   : > { %p1299_p10 = por %p47_p8, %p46_p7  ;;  %p37_p11 = scmp.eq.s32.totalorder %s35_s30, 0 }
  0x12   : > { %p1305_p12 = por %p1272_p1, %p52_p9  ;;  %s172_s6 = sand.u32 1, %s1196_s14  }
  0x13   : > { %s940_s7 = sshll.u32 %s1204_s16, 5  ;;  %p992_p13 = scmp.lt.s32.totalorder %s1208_s17, 3 }
  0x14   : > { %s1312_s8 = scalar_select %p37_p11, %s1196_s14, %s39_s29  }
  0x15   : > { %s798_s9 = sshll.u32 %s172_s6, 5  ;;  %s183_s12 = scalar_lea.hbm %s1427_s0, %s940_s7 }
  0x16   : > { %s185_s20 = sshll.u32 %s183_s12, 4  ;;  %s176_s21 = scalar_lea.vmem [#allocation2], %s798_s9  ;;  %s186_s20 = int_to_ptr.hbm [resolvable:$true] %s185_s20 }
  0x17   : > { %s187_s22 = sshll.u32 %s176_s21, 4  ;;  %p988_p0 = pnand %p992_p13, %p1299_p10  ;;  %s188_s22 = int_to_ptr.vmem [resolvable:$true] %s187_s22 }
  0x18   : > { %s173_s24 = scalar_lea.sflag [#allocation3], %s172_s6  ;;  %196 = sbr.rel (%p1280_p3) target bundleno = 388 (0x184), region = 32 }
  0x19   : > { %990 = dma.hbm_to_vmem [thread:$0]  (!%p988_p0), %s186_s20, 512, %s188_s22, %s173_s24  }
  0x1a   : > { %s198_s25 = sand.u32 (!%p1280_p3), 1, %s1192_s13  }
  0x1b   : > { %s802_s26 = sshll.u32 (!%p1280_p3), %s198_s25, 5  ;;  %s199_s27 = scalar_lea.sflag (!%p1280_p3), [#allocation3], %s198_s25 }
  0x1c   : > { %s1323_s29 = scalar_lea.vmem (!%p1280_p3), [#allocation2], %s802_s26 }
  0x1d   : > { %1175 = dma.done.wait (%p1305_p12), %s199_s27, 512  }
  0x1e   : > { %1177 = vsyncadd (%p1305_p12), %s199_s27, 4294966784 }
  0x1f   : > { %1179 = dma.done.wait (%p1272_p1), [#allocation6], 12288  }
  0x20   : > { %1181 = vsyncadd (%p1272_p1), [#allocation6], 4294955008  ;;  %p804_p2 = scmp.ne.s32.totalorder %s1200_s15, 0 }
  0x22   : > { %242 = sbr.rel (%p804_p2) target bundleno = 44 (0x2c), region = 44 }
  0x27   : > { %v1213_v0 = vmov 0.0  }
  0x28   : > { %243 = vst [vmem:[#allocation7] sm:$0xff] %v1213_v0 }
  0x29   : > { %244 = vst [vmem:[#allocation7 + $0x8] sm:$0xff] %v1213_v0 }
  0x2a   : > { %245 = vst [vmem:[#allocation7 + $0x10] sm:$0xff] %v1213_v0 }
  0x2b   : > { %246 = vst [vmem:[#allocation7 + $0x18] sm:$0xff] %v1213_v0 }
  0x2c PF: > { %s805_s23 = sshll.u32 %s1200_s15, 9  ;;  %v1358_v21 = vld [vmem:[%s1323_s29] sm:$0xff]  ;;  %v1361_v22 = vld [vmem:[%s1323_s29 + $0x8] sm:$0xff]  ;;  %v1366_v25 = vld [vmem:[%s1323_s29 + $0x10] sm:$0xff]  ;;  %p935_p1 = scmp.ne.s32.totalorder %s1200_s15, 2 }
  0x2d   : > { %s292_s30 = sshra.s32 %s805_s23, 3  ;;  %v250_v28 = vld [vmem:[%s1323_s29 + $0x18] sm:$0xff]  ;;  %v251_v29 = vunpack.c.0.s8 %v1358_v21  ;;  %v255_v30 = vunpack.c.1.s8 %v1358_v21  ;;  %v252_v31 = vunpack.c.0.s8 %v1361_v22  ;;  %v256_v32 = vunpack.c.1.s8 %v1361_v22 }
  0x2e   : > { %s806_s4 = sshll.u32 %s292_s30, 2  ;;  %v253_v35 = vunpack.c.0.s8 %v1366_v25  ;;  %v257_v36 = vunpack.c.1.s8 %v1366_v25  ;;  %v254_v37 = vunpack.c.0.s8 %v250_v28  ;;  %v258_v38 = vunpack.c.1.s8 %v250_v28 }
  0x2f   : > { %s1335_s5 = scalar_lea.vmem [#allocation5], %s806_s4  ;;  %v267_v41 = vcvt.s32.f32 %v251_v29  ;;  %v271_v42 = vcvt.s32.f32 %v255_v30  ;;  %v268_v43 = vcvt.s32.f32 %v252_v31  ;;  %v272_v44 = vcvt.s32.f32 %v256_v32 }
  0x30   : > { %v948_v1 = vld [vmem:[%s1335_s5 + $0x38] sm:$0xff]  ;;  %v947_v5 = vld [vmem:[%s1335_s5 + $0x30] sm:$0xff]  ;;  %v946_v9 = vld [vmem:[%s1335_s5 + $0x28] sm:$0xff]  ;;  %v269_v47 = vcvt.s32.f32 %v253_v35  ;;  %v273_v48 = vcvt.s32.f32 %v257_v36  ;;  %v270_v49 = vcvt.s32.f32 %v254_v37  ;;  %v274_v50 = vcvt.s32.f32 %v258_v38 }
  0x31   : > { %v956_v2 = vld [vmem:[%s1335_s5 + $0x78] sm:$0xff]  ;;  %556 = vmatpush.bf16.msra.mxu0 %v948_v1  ;;  %v955_v6 = vld [vmem:[%s1335_s5 + $0x70] sm:$0xff]  ;;  %v954_v10 = vld [vmem:[%s1335_s5 + $0x68] sm:$0xff]  ;;  %v283_v53 = vpack.c.bf16 %v271_v42, %v267_v41  ;;  %v284_v54 = vpack.c.bf16 %v272_v44, %v268_v43  ;;  %v259_v57 = vunpack.c.2.s8 %v1358_v21  ;;  %v263_v58 = vunpack.c.3.s8 %v1358_v21 }
  0x32   : > { %v964_v3 = vld [vmem:[%s1335_s5 + $0xb8] sm:$0xff]  ;;  %575 = vmatpush.bf16.msra.mxu1 %v956_v2  ;;  %v963_v7 = vld [vmem:[%s1335_s5 + $0xb0] sm:$0xff]  ;;  %v962_v11 = vld [vmem:[%s1335_s5 + $0xa8] sm:$0xff]  ;;  %v285_v55 = vpack.c.bf16 %v273_v48, %v269_v47  ;;  %v286_v56 = vpack.c.bf16 %v274_v50, %v270_v49  ;;  %v260_v59 = vunpack.c.2.s8 %v1361_v22  ;;  %v264_v60 = vunpack.c.3.s8 %v1361_v22 }
  0x33   : > { %v972_v4 = vld [vmem:[%s1335_s5 + $0xf8] sm:$0xff]  ;;  %594 = vmatpush.bf16.msra.mxu2 %v964_v3  ;;  %v971_v8 = vld [vmem:[%s1335_s5 + $0xf0] sm:$0xff]  ;;  %v970_v12 = vld [vmem:[%s1335_s5 + $0xe8] sm:$0xff]  ;;  %v261_v61 = vunpack.c.2.s8 %v1366_v25  ;;  %v265_v62 = vunpack.c.3.s8 %v1366_v25  ;;  %v262_v63 = vunpack.c.2.s8 %v250_v28  ;;  %v266_v0 = vunpack.c.3.s8 %v250_v28 }
  0x34   : > { %613 = vmatpush.bf16.msra.mxu3 %v972_v4  ;;  %v945_v13 = vld [vmem:[%s1335_s5 + $0x20] sm:$0xff]  ;;  %v944_v17 = vld [vmem:[%s1335_s5 + $0x18] sm:$0xff]  ;;  %v943_v23 = vld [vmem:[%s1335_s5 + $0x10] sm:$0xff]  ;;  %v275_v1 = vcvt.s32.f32 %v259_v57  ;;  %v279_v2 = vcvt.s32.f32 %v263_v58  ;;  %v276_v3 = vcvt.s32.f32 %v260_v59  ;;  %v280_v4 = vcvt.s32.f32 %v264_v60 }
  0x35   : > { %557 = vmatpush.bf16.msra.mxu0 %v947_v5  ;;  %v953_v14 = vld [vmem:[%s1335_s5 + $0x60] sm:$0xff]  ;;  %v952_v18 = vld [vmem:[%s1335_s5 + $0x58] sm:$0xff]  ;;  %v951_v24 = vld [vmem:[%s1335_s5 + $0x50] sm:$0xff]  ;;  %v277_v5 = vcvt.s32.f32 %v261_v61 }
  0x36   : > { %576 = vmatpush.bf16.msra.mxu1 %v955_v6  ;;  %v961_v15 = vld [vmem:[%s1335_s5 + $0xa0] sm:$0xff]  ;;  %v960_v19 = vld [vmem:[%s1335_s5 + $0x98] sm:$0xff]  ;;  %v959_v26 = vld [vmem:[%s1335_s5 + $0x90] sm:$0xff]  ;;  %v281_v6 = vcvt.s32.f32 %v265_v62 }
  0x37   : > { %595 = vmatpush.bf16.msra.mxu2 %v963_v7  ;;  %v969_v16 = vld [vmem:[%s1335_s5 + $0xe0] sm:$0xff]  ;;  %v968_v20 = vld [vmem:[%s1335_s5 + $0xd8] sm:$0xff]  ;;  %v967_v27 = vld [vmem:[%s1335_s5 + $0xd0] sm:$0xff]  ;;  %v278_v7 = vcvt.s32.f32 %v262_v63 }
  0x38   : > { %614 = vmatpush.bf16.msra.mxu3 %v971_v8  ;;  %v942_v33 = vld [vmem:[%s1335_s5 + $0x8] sm:$0xff]  ;;  %v941_v45 = vld [vmem:[%s1335_s5] sm:$0xff]  ;;  %v282_v8 = vcvt.s32.f32 %v266_v0  ;;  %v362_v37 = vld [vmem:[#allocation7 + $0x10] sm:$0xff] }
  0x39   : > { %558 = vmatpush.bf16.msra.mxu0 %v946_v9  ;;  %v950_v34 = vld [vmem:[%s1335_s5 + $0x48] sm:$0xff]  ;;  %v949_v46 = vld [vmem:[%s1335_s5 + $0x40] sm:$0xff]  ;;  %v287_v9 = vpack.c.bf16 %v279_v2, %v275_v1 }
  0x3a   : > { %577 = vmatpush.bf16.msra.mxu1 %v954_v10  ;;  %v958_v39 = vld [vmem:[%s1335_s5 + $0x88] sm:$0xff]  ;;  %v957_v51 = vld [vmem:[%s1335_s5 + $0x80] sm:$0xff]  ;;  %v288_v10 = vpack.c.bf16 %v280_v4, %v276_v3 }
  0x3b   : > { %596 = vmatpush.bf16.msra.mxu2 %v962_v11  ;;  %v966_v40 = vld [vmem:[%s1335_s5 + $0xc8] sm:$0xff]  ;;  %v965_v52 = vld [vmem:[%s1335_s5 + $0xc0] sm:$0xff]  ;;  %v289_v11 = vpack.c.bf16 %v281_v6, %v277_v5 }
  0x3c   : > { %615 = vmatpush.bf16.msra.mxu3 %v970_v12  ;;  %v290_v12 = vpack.c.bf16 %v282_v8, %v278_v7  ;;  %v360_v21 = vld [vmem:[#allocation7] sm:$0xff]  ;;  %v361_v28 = vld [vmem:[#allocation7 + $0x8] sm:$0xff] }
  0x3d   : > { %559 = vmatpush.bf16.msra.mxu0 %v945_v13 }
  0x3e   : > { %578 = vmatpush.bf16.msra.mxu1 %v953_v14 }
  0x3f   : > { %597 = vmatpush.bf16.msra.mxu2 %v961_v15 }
  0x40   : > { %616 = vmatpush.bf16.msra.mxu3 %v969_v16 }
  0x41   : > { %560 = vmatpush.bf16.msra.mxu0 %v944_v17 }
  0x42   : > { %579 = vmatpush.bf16.msra.mxu1 %v952_v18 }
  0x43   : > { %598 = vmatpush.bf16.msra.mxu2 %v960_v19 }
  0x44   : > { %617 = vmatpush.bf16.msra.mxu3 %v968_v20 }
  0x45   : > { %561 = vmatpush.bf16.msra.mxu0 %v943_v23 }
  0x46   : > { %580 = vmatpush.bf16.msra.mxu1 %v951_v24 }
  0x47   : > { %599 = vmatpush.bf16.msra.mxu2 %v959_v26 }
  0x48   : > { %618 = vmatpush.bf16.msra.mxu3 %v967_v27 }
  0x49   : > { %562 = vmatpush.bf16.msra.mxu0 %v942_v33 }
  0x4a   : > { %581 = vmatpush.bf16.msra.mxu1 %v950_v34 }
  0x4b   : > { %600 = vmatpush.bf16.msra.mxu2 %v958_v39 }
  0x4c   : > { %619 = vmatpush.bf16.msra.mxu3 %v966_v40 }
  0x4d   : > { %563 = vmatpush.bf16.msra.mxu0 %v941_v45  ;;  %v363_v45 = vld [vmem:[#allocation7 + $0x18] sm:$0xff] }
  0x4e   : > { %582 = vmatpush.bf16.msra.mxu1 %v949_v46 }
  0x4f   : > { %601 = vmatpush.bf16.msra.mxu2 %v957_v51 }
  0x50   : > { %620 = vmatpush.bf16.msra.mxu3 %v965_v52  ;;  %564 = vmatmul.bf16.vlgmr.msra.gmra.mxu0 %v283_v53 }
  0x51   : > { %583 = vmatmul.bf16.vlgmr.msra.gmra.mxu1 %v284_v54 }
  0x52   : > { %602 = vmatmul.bf16.vlgmr.msra.gmra.mxu2 %v285_v55 }
  0x53   : > { %621 = vmatmul.bf16.vlgmr.msra.gmra.mxu3 %v286_v56 }
  0x60   : > { %569 = vmatmul.bf16.gmra.mxu0 %v287_v9 }
  0x61   : > { %588 = vmatmul.bf16.gmra.mxu1 %v288_v10 }
  0x62   : > { %607 = vmatmul.bf16.gmra.mxu2 %v289_v11 }
  0x63   : > { %626 = vmatmul.bf16.gmra.mxu3 %v290_v12 }
  0xcd   : > { %v565_v13 = vpop.f32.mrf.mxu0 }
  0xce   : > { %v584_v14 = vpop.f32.mrf.mxu1 }
  0xcf   : > { %v585_v15 = vadd.f32 %v584_v14, %v565_v13 }
  0xd5   : > { %v603_v16 = vpop.f32.mrf.mxu2  ;;  %v567_v19 = vpop.f32.mrf.mxu0 }
  0xd6   : > { %v622_v17 = vpop.f32.mrf.mxu3  ;;  %v604_v18 = vadd.f32 %v603_v16, %v585_v15  ;;  %v586_v20 = vpop.f32.mrf.mxu1 }
  0xd7   : > { %v587_v24 = vadd.f32 %v586_v20, %v567_v19 }
  0xd8   : > { %v623_v22 = vadd.f32 %v622_v17, %v604_v18 }
  0xda   : > { %v632_v23 = vadd.f32 %v623_v22, %v360_v21 }
  0xdc   : > { %636 = vst [vmem:[#allocation7] sm:$0xff] %v632_v23 }
  0xdd   : > { %v605_v25 = vpop.f32.mrf.mxu2  ;;  %v570_v29 = vpop.f32.mrf.mxu0 }
  0xde   : > { %v624_v26 = vpop.f32.mrf.mxu3  ;;  %v606_v27 = vadd.f32 %v605_v25, %v587_v24  ;;  %v589_v30 = vpop.f32.mrf.mxu1 }
  0xdf   : > { %v590_v33 = vadd.f32 %v589_v30, %v570_v29 }
  0xe0   : > { %v625_v31 = vadd.f32 %v624_v26, %v606_v27 }
  0xe2   : > { %v633_v32 = vadd.f32 %v625_v31, %v361_v28 }
  0xe4   : > { %637 = vst [vmem:[#allocation7 + $0x8] sm:$0xff] %v633_v32 }
  0xe5   : > { %v608_v34 = vpop.f32.mrf.mxu2  ;;  %v572_v39 = vpop.f32.mrf.mxu0 }
  0xe6   : > { %v627_v35 = vpop.f32.mrf.mxu3  ;;  %v609_v36 = vadd.f32 %v608_v34, %v590_v33  ;;  %v591_v40 = vpop.f32.mrf.mxu1 }
  0xe7   : > { %v592_v42 = vadd.f32 %v591_v40, %v572_v39 }
  0xe8   : > { %v628_v38 = vadd.f32 %v627_v35, %v609_v36 }
  0xea   : > { %v634_v41 = vadd.f32 %v628_v38, %v362_v37 }
  0xec   : > { %638 = vst [vmem:[#allocation7 + $0x10] sm:$0xff] %v634_v41 }
  0xed   : > { %v610_v43 = vpop.f32.mrf.mxu2 }
  0xee   : > { %v611_v44 = vadd.f32 %v610_v43, %v592_v42  ;;  %v629_v46 = vpop.f32.mrf.mxu3 }
  0xf0   : > { %v630_v47 = vadd.f32 %v629_v46, %v611_v44  ;;  %643 = sbr.rel (%p935_p1) target bundleno = 382 (0x17e), region = 48 }
  0xf2   : > { %v635_v48 = vadd.f32 %v630_v47, %v363_v45 }
  0xf4   : > { %639 = vst [vmem:[#allocation7 + $0x18] sm:$0xff] %v635_v48 }
  0xf5   : > { %v646_v49 = vld [vmem:[%s1428_s1 + $0x10] sm:$0xff]  ;;  %v644_v50 = vld [vmem:[%s1428_s1] sm:$0xff]  ;;  %v1214_v51 = vmov 0   ;;  %v647_v54 = vld [vmem:[%s1428_s1 + $0x18] sm:$0xff] }
  0xf6   : > { %1053 = vset.pattern.permute.xlu1 %v1214_v51  ;;  %1052 = vset.pattern.permute.xlu0 %v1214_v51  ;;  %v650_v52 = vmax.f32 %v646_v49, 1.0  ;;  %v648_v53 = vmax.f32 %v644_v50, 1.0  ;;  %v645_v55 = vld [vmem:[%s1428_s1 + $0x8] sm:$0xff]  ;;  %v651_v56 = vmax.f32 %v647_v54, 1.0  ;;  %v654_v62 = vld [vmem:[#allocation7 + $0x10] sm:$0xff]  ;;  %v652_v63 = vld [vmem:[#allocation7] sm:$0xff] }
  0xf7   : > { %v649_v57 = vmax.f32 %v645_v55, 1.0  ;;  %v653_v5 = vld [vmem:[#allocation7 + $0x8] sm:$0xff] }
  0xf8   : > { %1054 = vrcp.f32 %v650_v52 }
  0xf9   : > { %1056 = vrcp.f32 %v648_v53 }
  0xfa   : > { %1058 = vrcp.f32 %v651_v56 }
  0xfb   : > { %1060 = vrcp.f32 %v649_v57  ;;  %v655_v4 = vld [vmem:[#allocation7 + $0x18] sm:$0xff] }
  0xfe   : > { %v1055_v58 = vpop.eup %1054 }
  0xff   : > { %v1057_v59 = vpop.eup %1056  ;;  %672 = vperm.xlu1 %1053, %v1055_v58  }
 0x100   : > { %662 = vperm.xlu0 %1052, %v1057_v59   ;;  %v1059_v60 = vpop.eup %1058 }
 0x101   : > { %v1061_v61 = vpop.eup %1060 }
 0x107   : > { %677 = vperm.xlu1 %1053, %v1059_v60  }
 0x108   : > { %667 = vperm.xlu0 %1052, %v1061_v61  }
 0x171   : > { %v673_v0 = vpop.permute.xlu1 %672 }
 0x172   : > { %v682_v1 = vmul.f32 %v673_v0, %v654_v62  ;;  %v663_v2 = vpop.permute.xlu0 %662 }
 0x173   : > { %v680_v3 = vmul.f32 %v663_v2, %v652_v63 }
 0x174   : > { %686 = vst [vmem:[#allocation7 + $0x10] sm:$0xff] %v682_v1 }
 0x175   : > { %684 = vst [vmem:[#allocation7] sm:$0xff] %v680_v3 }
 0x179   : > { %v678_v6 = vpop.permute.xlu1 %677 }
 0x17a   : > { %v683_v7 = vmul.f32 %v678_v6, %v655_v4  ;;  %v668_v8 = vpop.permute.xlu0 %667 }
 0x17b   : > { %v681_v9 = vmul.f32 %v668_v8, %v653_v5 }
 0x17c   : > { %687 = vst [vmem:[#allocation7 + $0x18] sm:$0xff] %v683_v7 }
 0x17d   : > { %685 = vst [vmem:[#allocation7 + $0x8] sm:$0xff] %v681_v9 }
 0x17e PF: > { %p994_p3 = scmp.eq.s32.totalorder %s793_s18, 2  ;;  %s698_s22 = sshll.u32 %s1430_s3, 4  ;;  %s699_s22 = int_to_ptr.hbm [resolvable:$true] %s698_s22 }
 0x17f   : > { %s1215_s24 = smov [#allocation7]   ;;  %s1216_s26 = smov 128  }
 0x180   : > { %s696_s25 = sshll.u32 %s1215_s24, 4  ;;  %s1217_s27 = smov 8   ;;  %s697_s25 = int_to_ptr.vmem [resolvable:$true] %s696_s25 }
 0x181   : > { %980 = dma.vmem_to_hbm [thread:$0]  (%p994_p3), %s697_s25, 512, %s699_s22, [#allocation4], %s1216_s26, %s1216_s26, %s1217_s27  }
 0x182   : > { %1183 = dma.done.wait (%p994_p3), [#allocation4], 512  }
 0x183   : > { %1185 = vsyncadd (%p994_p3), [#allocation4], 4294966784 }
 0x184 PF: > { %s18_s17 = sadd.s32 1, %s1208_s17   ;;  %s1435_s12 = smov %s1192_s13 }
 0x185   : > { %p15_p4 = scmp.ge.s32.totalorder %s18_s17, 5   ;;  %s1436_s13 = smov %s1196_s14 }
 0x186   : > { %s1437_s14 = smov %s1312_s8  ;;  %s1438_s15 = smov %s1204_s16 }
 0x187   : > { %s1439_s16 = smov %s1441_s28  ;;  %17 = sbr.rel (!%p15_p4) target bundleno = 6 (0x6), region = 86 }
 0x18c   :  { %715 = vsyncpa [#allocation3], 1 }
 0x18d   :  { %717 = vsyncpa [#allocation3 + $0x1], 1 }
 0x18e   :  { %718 = vsyncpa [#allocation6], 1 }
 0x18f   :  { %719 = vsyncpa [#allocation4], 1 }
 0x190   :  { %721 = vsyncpa [#allocation4 + $0x1], 1 }

</bundles_post_ra>
